<compile_context>
chip_gen: v5e
topology: v5e:2x2
jax: 0.10.0
libtpu: 0.0.40
codegen_flags: <defaults>
</compile_context>

<pallas_src>
import functools

import jax
import jax.numpy as jnp
from jax.experimental import pallas as pl
from jax.experimental.pallas import tpu as pltpu


def _round_up(x, m):
    return ((x + m - 1) // m) * m


def _linear_kernel(x_ref, w_ref, b_ref, o_ref):
    # In-kernel activation cast (VPU) right before the MXU matmul; replaces a
    # separate full-HBM-pass XLA cast.  f32 accumulation on the MXU.
    x = x_ref[...].astype(w_ref.dtype)
    acc = jnp.dot(x, w_ref[...], preferred_element_type=jnp.float32)
    o_ref[...] = (acc + b_ref[...]).astype(o_ref.dtype)


def prepare_params(weight, bias, compute_dtype=jnp.bfloat16, lane_multiple=128):
    """One-time parameter preparation (do OUTSIDE the per-step forward).

    torch-convention weight (num_labels, dim) and bias (num_labels,) ->
      w_t : (dim, Np)  compute_dtype, Np = round_up(num_labels, lane_multiple)
      b_p : (1, Np)    f32, zero-padded
    lane_multiple=256 fills the 256-wide MXU columns on v6e/v7x for
    compute-bound probes; 128 is optimal for v5e / memory-bound probes.
    """
    N, D = weight.shape
    Np = _round_up(N, lane_multiple)
    w_t = jnp.zeros((D, Np), compute_dtype)
    w_t = w_t.at[:, :N].set(weight.T.astype(compute_dtype))
    b_p = jnp.zeros((1, Np), jnp.float32)
    b_p = b_p.at[:, :N].set(bias.astype(jnp.float32))
    return w_t, b_p


def _vmem_budget_and_limit():
    """Generation-aware VMEM sizing: ~70% of physical for tile selection,
    ~80% as the scoped compiler limit.  Falls back to v7x's 64 MiB (the
    smallest VMEM of any supported chip) if the hardware query fails."""
    phys = 64 << 20
    try:
        info = pltpu.get_tpu_info()
        for attr in ("vmem_capacity_bytes", "vmem_bytes", "vmem_size_bytes"):
            v = getattr(info, attr, None)
            if isinstance(v, int) and v > 0:
                phys = v
                break
    except Exception:
        pass
    budget = int(phys * 0.70)
    limit = min(int(phys * 0.80), budget + (16 << 20))
    return budget, limit


def _choose_tiles(batch, d, n_pad, x_itemsize, out_itemsize, budget_bytes):
    """Pick (TM, TN).  Prefer a fully VMEM-resident, single-buffered weight
    with the largest affordable batch tile; fall back to tiling the label axis
    when the padded weight alone blows the budget."""

    def vmem_need(tm, tn, w_bufs):
        w = w_bufs * (d * tn * 2)                                # bf16 weight
        b = w_bufs * (tn * 4)                                    # f32 bias
        per_row = 2 * d * x_itemsize + 2 * tn * out_itemsize     # 2x-buffered x/out
        return w + b + tm * per_row

    def pick_tm(tn, w_bufs):
        tm = 2048  # big tiles: longer DMAs, ~85%+ of HBM roofline
        while tm > 128 and vmem_need(tm, tn, w_bufs) > budget_bytes:
            tm //= 2
        return tm

    # 1) resident weight, single buffer (constant index map => DMA'd once).
    tn = n_pad
    tm = pick_tm(tn, w_bufs=1)
    resident = vmem_need(tm, tn, 1) <= budget_bytes
    if not resident:
        # 2) label-tiled fallback: double-buffered weight tiles (lane-dense TN).
        for cand in (2048, 1024, 512, 256, 128):
            if n_pad % cand == 0:
                tn = cand
                tm = pick_tm(tn, w_bufs=2)
                if vmem_need(tm, tn, 2) <= budget_bytes:
                    break

    # Don't allocate batch tiles wider than the (sublane-padded) batch.
    tm = min(tm, _round_up(batch, 8))
    # Guarantee >= 2 batch grid steps for moderate/large B so the "parallel"
    # axis shards across both v7x TensorCores (neutral on 1-TC v5e/v6e).
    if batch >= 256 and pl.cdiv(batch, tm) < 2:
        tm = _round_up(pl.cdiv(batch, 2), 128)

    return tm, tn, resident


@functools.partial(jax.jit,
                   static_argnames=("num_labels", "out_dtype", "trim_labels"))
def linear_classifier_forward(x, w_t, b_p, num_labels,
                              out_dtype=jnp.float32, trim_labels=True):
    """Forward pass of LinearClassifier.

    Args:
      x:   (B, ...) frozen features (any float dtype); trailing dims flattened.
      w_t: (D, Np) prepared weight from prepare_params().
      b_p: (1, Np) prepared bias from prepare_params().
      num_labels: true number of labels (<= Np).
      out_dtype: logits dtype (jnp.bfloat16 halves output HBM traffic on v6e).
      trim_labels: if False, return lane-padded (B, Np) logits and let the
        consumer slice lazily (avoids an extra XLA copy of the logits).
    Returns:
      (B, num_labels) logits (or (B, Np) if trim_labels=False).
    """
    B = x.shape[0]
    D, Np = w_t.shape
    # Flatten only: no host-side cast, no batch padding.
    x2d = x.reshape(B, -1)
    assert x2d.shape[1] == D, f"flattened dim {x2d.shape[1]} != weight dim {D}"

    budget, vmem_limit = _vmem_budget_and_limit()
    out_itemsize = jnp.dtype(out_dtype).itemsize
    TM, TN, resident = _choose_tiles(B, D, Np, x2d.dtype.itemsize,
                                     out_itemsize, budget)

    n_b = pl.cdiv(B, TM)       # ragged last batch tile handled by Pallas
    n_n = Np // TN
    grid = (n_b, n_n)

    # Single-buffer weight/bias when resident (constant index map -> no
    # re-fetch); default double-buffering when the label axis is tiled.
    # TODO(synk): optionally sweep pl.Buffered(3) on the x spec if profiling
    # shows exposed DMA after enlarging TM.
    w_mode = pl.Buffered(1) if resident else pl.Buffered(2)

    bytes_accessed = (n_n * B * D * x2d.dtype.itemsize
                      + D * Np * w_t.dtype.itemsize
                      + Np * 4
                      + B * Np * out_itemsize)
    cost = pl.CostEstimate(flops=2 * B * D * Np,
                           transcendentals=0,
                           bytes_accessed=bytes_accessed)

    out = pl.pallas_call(
        _linear_kernel,
        out_shape=jax.ShapeDtypeStruct((B, Np), out_dtype),
        grid_spec=pltpu.PrefetchScalarGridSpec(
            num_scalar_prefetch=0,
            grid=grid,
            in_specs=[
                pl.BlockSpec((TM, D), lambda i, j: (i, 0)),     # x: batch-tiled
                pl.BlockSpec((D, TN), lambda i, j: (0, j),      # weight
                             pipeline_mode=w_mode),
                pl.BlockSpec((1, TN), lambda i, j: (0, j),      # bias
                             pipeline_mode=w_mode),
            ],
            out_specs=pl.BlockSpec((TM, TN), lambda i, j: (i, j)),
        ),
        compiler_params=pltpu.CompilerParams(
            dimension_semantics=("parallel", "parallel"),
            vmem_limit_bytes=int(vmem_limit),
        ),
        cost_estimate=cost,
    )(x2d, w_t, b_p)

    if trim_labels and Np != num_labels:
        out = out[:, :num_labels]
    return out


if __name__ == "__main__":
    key = jax.random.PRNGKey(0)
    kx, kw = jax.random.split(key)

    # Small shapes consistent with the module: frozen features of shape
    # (batch=2, C=2, H=4, W=4) -> flattened dim = 32; num_labels = 16.
    # NOTE: this toy shape is overhead-bound; tiling is tuned for realistic
    # probe shapes (B in the thousands, D 768-4096, N 100-10000+).
    B, C, H, W = 2, 2, 4, 4
    dim = C * H * W
    num_labels = 16

    x = jax.random.normal(kx, (B, C, H, W), dtype=jnp.float32)

    # Deterministic parameter init matching the module's __init__:
    #   weight ~ N(0, 0.01), bias = 0
    weight = 0.01 * jax.random.normal(kw, (num_labels, dim), dtype=jnp.float32)
    bias = jnp.zeros((num_labels,), dtype=jnp.float32)

    # One-time param prep (transpose + lane-pad + bf16 cast).
    w_t, b_p = prepare_params(weight, bias)

    out = linear_classifier_forward(x, w_t, b_p, num_labels)
    out = jax.block_until_ready(out)

    # Reference check in plain JAX (f32). bf16 compute => loosened tolerance.
    ref = x.reshape(B, -1) @ weight.T + bias
    assert out.shape == (B, num_labels)
    assert jnp.allclose(out, ref, atol=1e-2, rtol=2e-2), (
        f"max abs err {jnp.max(jnp.abs(out - ref))}")

    print("KERNEL_OK")
</pallas_src>

<mosaic_0001>
module attributes {stable_mosaic.version = 11 : i64} {
  func.func @_linear_kernel(%arg0: i32, %arg1: i32, %arg2: memref<8x32xf32, #tpu.memory_space<vmem>>, %arg3: memref<32x128xbf16, #tpu.memory_space<vmem>>, %arg4: memref<1x128xf32, #tpu.memory_space<vmem>>, %arg5: memref<8x128xf32, #tpu.memory_space<vmem>>) attributes {dimension_semantics = [#tpu.dimension_semantics<parallel>, #tpu.dimension_semantics<parallel>], iteration_bounds = array<i64: 1, 1>, scalar_prefetch = 0 : i64, scratch_operands = 0 : i64, tpu.core_type = #tpu.core_type<tc>, window_params = [{transform_indices = @transform_0, window_bounds = array<i64: 8, 32>}, {pipeline_mode = #tpu.pipeline_mode<synchronous>, transform_indices = @transform_1, window_bounds = array<i64: 32, 128>}, {pipeline_mode = #tpu.pipeline_mode<synchronous>, transform_indices = @transform_2, window_bounds = array<i64: 1, 128>}, {transform_indices = @transform_3, window_bounds = array<i64: 8, 128>}]} {
    %c0 = arith.constant 0 : index
    %c0_0 = arith.constant 0 : index
    %0 = vector.load %arg2[%c0, %c0_0] : memref<8x32xf32, #tpu.memory_space<vmem>>, vector<8x32xf32>
    %1 = arith.truncf %0 : vector<8x32xf32> to vector<8x32xbf16>
    %c0_1 = arith.constant 0 : index
    %c0_2 = arith.constant 0 : index
    %2 = vector.load %arg3[%c0_1, %c0_2] : memref<32x128xbf16, #tpu.memory_space<vmem>>, vector<32x128xbf16>
    %cst = arith.constant dense<0.000000e+00> : vector<8x128xf32>
    %3 = tpu.matmul %1, %2, %cst {dimension_numbers = #tpu.dot_dimension_numbers<[1], [0], [0], [1], [0, 0, 1, 1], [], []>} : vector<8x32xbf16>, vector<32x128xbf16>, vector<8x128xf32> -> vector<8x128xf32>
    %c0_3 = arith.constant 0 : index
    %c0_4 = arith.constant 0 : index
    %4 = vector.load %arg4[%c0_3, %c0_4] : memref<1x128xf32, #tpu.memory_space<vmem>>, vector<1x128xf32>
    %5 = vector.broadcast %4 : vector<1x128xf32> to vector<8x128xf32>
    %6 = arith.addf %3, %5 : vector<8x128xf32>
    %c0_5 = arith.constant 0 : index
    %c0_6 = arith.constant 0 : index
    %7 = vector.load %arg5[%c0_5, %c0_6] : memref<8x128xf32, #tpu.memory_space<vmem>>, vector<8x128xf32>
    tpu.vector_store %arg5[%c0_5, %c0_6], %6 {strides = array<i32>} : memref<8x128xf32, #tpu.memory_space<vmem>>, vector<8x128xf32>,
    return
  }
  func.func @transform_0(%arg0: i32, %arg1: i32) -> (i32, i32) {
    %c0_i32 = arith.constant 0 : i32
    %c0_i32_0 = arith.constant 0 : i32
    return %arg0, %c0_i32 : i32, i32
  }
  func.func @transform_1(%arg0: i32, %arg1: i32) -> (i32, i32) {
    %c0_i32 = arith.constant 0 : i32
    %c0_i32_0 = arith.constant 0 : i32
    return %c0_i32, %arg1 : i32, i32
  }
  func.func @transform_2(%arg0: i32, %arg1: i32) -> (i32, i32) {
    %c0_i32 = arith.constant 0 : i32
    %c0_i32_0 = arith.constant 0 : i32
    return %c0_i32, %arg1 : i32, i32
  }
  func.func @transform_3(%arg0: i32, %arg1: i32) -> (i32, i32) {
    %c0_i32 = arith.constant 0 : i32
    return %arg0, %arg1 : i32, i32
  }
}

</mosaic_0001>

<bundles_post_ra>
// kernel: linear_classifier_forward.1
= control target key start
LH: loop header
LB: loop body
LE: loop exit
PB: predicated region body
PF: predicated region fallthrough
CT: control target
= control target key end

     0   :  { %8 = vsyncpa [#allocation3], 0  ;;  %vm38_vm0 = vcmask 261120   ;;  %s153_s0 = inlined_call_operand.vmem [shape: f32[2,32], index: 0, kind: input, shape index: {}]   ;;  %s154_s1 = inlined_call_operand.vmem [shape: bf16[32,128], index: 1, kind: input, shape index: {}]   ;;  %s155_s2 = inlined_call_operand.vmem [shape: f32[1,128], index: 2, kind: input, shape index: {}]   ;;  %s156_s3 = inlined_call_operand.hbm [shape: f32[2,128], index: 3, kind: output, shape index: {}]  }
   0x1   :  { %v84_v0 = vld [vmem:[%s154_s1 + $0x8] sm:$0xff]  ;;  %v83_v1 = vld [vmem:[%s154_s1] sm:$0xff] }
   0x2   :  { %48 = vmatpush.bf16.msra.mxu0 %v84_v0  ;;  %v16_v2 = vld [vmem:[%s153_s0] sm:$0xff] }
   0x3   :  { %v17_v3 = vpack.c.bf16 %v16_v2, %v16_v2  ;;  %v88_v4 = vld [vmem:[%s155_s2] ss:$0 sm:$0xff] }
   0x6   :  { %49 = vmatpush.bf16.msra.mxu0 %v83_v1 }
   0x9   :  { %82 = vmatmul.msk.bf16.vlgmr.msra.gmra.mxu0 %vm38_vm0, %v17_v3 }
  0x86   :  { %v51_v5 = vpop.f32.mrf.mxu0 }
  0x87   :  { %v52_v6 = vadd.f32 %v88_v4, %v51_v5 }
  0x89   :  { %55 = vst [vmem:[#allocation2] sm:$0xff] %v52_v6 }
  0x8e   :  { %v53_v7 = vpop.f32.mrf.mxu0 }
  0x8f   :  { %59 = vsyncadd [#allocation3], 96  ;;  %s62_s1 = sshll.u32 %s156_s3, 4  ;;  %s115_s22 = smov [#allocation2]   ;;  %s63_s1 = int_to_ptr.hbm [resolvable:$true] %s62_s1 }
  0x90   :  { %s60_s23 = sshll.u32 %s115_s22, 4  ;;  %s116_s0 = smov 32   ;;  %s61_s23 = int_to_ptr.vmem [resolvable:$true] %s60_s23 }
  0x91   :  { %s117_s24 = smov 2  }
  0x92   :  { %68 = dma.vmem_to_hbm [thread:$0]  %s61_s23, 32, %s63_s1, [#allocation3], %s116_s0, %s116_s0, %s117_s24  }
  0x93   :  { %113 = dma.done.wait [#allocation3], 128  }
  0x94   :  { %114 = vsyncadd [#allocation3], 4294967168 }
  0x95   :  { %73 = vsyncpa [#allocation3], 1 }

</bundles_post_ra>
